<compile_context>
chip_gen: v7x
topology: tpu7x:2x2x1
jax: 0.10.0
libtpu: 0.0.40
codegen_flags: <defaults>
</compile_context>

<pallas_src>
import jax
import jax.numpy as jnp
from jax import lax
from jax.experimental import pallas as pl
from jax.experimental.pallas import tpu as pltpu

IN_FEATURES = 2
OUT_FEATURES = 1
LANES = 128                     # batch elements per output row
COLS = IN_FEATURES * LANES      # 256 interleaved input lanes per row


def _round_up(x, m):
    return ((x + m - 1) // m) * m


def _choose_tile_rows(r):
    """Rows (1 KiB of x each) per grid step.

    - tiny inputs: a single tile (block == full array, so (8,128) rule is met),
    - otherwise ~1/8 of the rows (>= ~8 grid steps for megacore / pipelining),
      sublane-aligned, capped at 2048 rows (~2 MiB of x per tile).
    """
    if r <= 8:
        return r
    t = _round_up(-(-r // 8), 8)
    return int(min(2048, t))


def simplenet_kernel(bias_ref, x_ref, w_ref, o_ref):
    # bias_ref: SMEM [1]            -> b, resident for the whole grid
    # x_ref:    VMEM [tbr, 256]     -> lanes interleave (f0, f1) per batch elem
    # w_ref:    VMEM [256, 128]     -> de-interleave + weight matrix (resident)
    # o_ref:    VMEM [tbr, 128]     -> dense output slab, batch = 128*row + lane
    z = jnp.dot(
        x_ref[...],
        w_ref[...],
        preferred_element_type=jnp.float32,
        precision=lax.Precision.HIGHEST,   # keep f32 accuracy on the MXU
    )
    z = z + bias_ref[0]
    e = jnp.exp(-z)                                   # EUP
    o_ref[...] = pl.reciprocal(1.0 + e, approx=False)  # approx=True ok on v5e


def simplenet_forward(x, w, b):
    """x: [B, 2] f32, w: [1, 2] f32, b: [1] f32 -> [B, 1] f32."""
    batch = x.shape[0]

    r = _round_up(batch, LANES) // LANES     # rows of 128 batch elements
    tbr = _choose_tile_rows(r)
    r_pad = _round_up(r, tbr)
    b_pad = r_pad * LANES

    if b_pad != batch:
        x = jnp.pad(x, ((0, b_pad - batch), (0, 0)))
    # Free row-major reshape: no transposed copy of x is ever materialized.
    x_view = x.reshape(r_pad, COLS)

    # De-interleave + contraction matrix: W_big[2j, j] = w0, W_big[2j+1, j] = w1.
    row = jnp.arange(COLS, dtype=jnp.int32)[:, None]
    col = jnp.arange(LANES, dtype=jnp.int32)[None, :]
    w_big = (jnp.where(row == 2 * col, w[0, 0], 0.0)
             + jnp.where(row == 2 * col + 1, w[0, 1], 0.0)).astype(jnp.float32)

    bias = b.reshape(OUT_FEATURES).astype(jnp.float32)

    grid = (r_pad // tbr,)

    out = pl.pallas_call(
        simplenet_kernel,
        out_shape=jax.ShapeDtypeStruct((r_pad, LANES), jnp.float32),
        grid_spec=pltpu.PrefetchScalarGridSpec(
            num_scalar_prefetch=0,
            grid=grid,
            in_specs=[
                # bias: once into SMEM, untiled.
                pl.BlockSpec(memory_space=pltpu.MemorySpace.SMEM),
                # x stream: dense (tbr, 256) tiles over the batch rows.
                pl.BlockSpec((tbr, COLS), lambda i: (i, 0)),
                # W_big: constant block index -> DMA'd once, stays resident.
                pl.BlockSpec((COLS, LANES), lambda i: (0, 0)),
            ],
            out_specs=pl.BlockSpec((tbr, LANES), lambda i: (i, 0)),
        ),
        compiler_params=pltpu.CompilerParams(
            dimension_semantics=("parallel",),
        ),
        cost_estimate=pl.CostEstimate(
            flops=2 * r_pad * COLS * LANES,
            transcendentals=2 * r_pad * LANES,
            bytes_accessed=(r_pad * COLS + r_pad * LANES + COLS * LANES + 1) * 4,
        ),
    )(bias, x_view, w_big)

    # Back to PyTorch layout: [B, 1] (reshape is free, slice only if padded).
    return out.reshape(b_pad, OUT_FEATURES)[:batch]


if __name__ == "__main__":
    key = jax.random.PRNGKey(0)
    kx, kw, kb = jax.random.split(key, 3)

    batch = 8
    x = jax.random.normal(kx, (batch, IN_FEATURES), dtype=jnp.float32)

    # Deterministic parameter init (mimics nn.Linear's uniform(-1/sqrt(fan_in), ...))
    bound = 1.0 / jnp.sqrt(jnp.float32(IN_FEATURES))
    w = jax.random.uniform(kw, (OUT_FEATURES, IN_FEATURES),
                           minval=-bound, maxval=bound, dtype=jnp.float32)
    b = jax.random.uniform(kb, (OUT_FEATURES,),
                           minval=-bound, maxval=bound, dtype=jnp.float32)

    fwd = jax.jit(simplenet_forward)
    out = fwd(x, w, b)
    jax.block_until_ready(out)

    # Reference check in plain JAX
    ref = jax.nn.sigmoid(x @ w.T + b)
    assert out.shape == (batch, OUT_FEATURES)
    assert jnp.allclose(out, ref, atol=1e-5), "mismatch vs reference"

    print("KERNEL_OK")
</pallas_src>

<mosaic_0001>
module attributes {stable_mosaic.version = 11 : i64} {
  func.func @simplenet_kernel(%arg0: i32, %arg1: memref<1xf32, #tpu.memory_space<smem>>, %arg2: memref<1x256xf32, #tpu.memory_space<vmem>>, %arg3: memref<256x128xf32, #tpu.memory_space<vmem>>, %arg4: memref<1x128xf32, #tpu.memory_space<vmem>>) attributes {dimension_semantics = [#tpu.dimension_semantics<parallel>], iteration_bounds = array<i64: 1>, scalar_prefetch = 0 : i64, scratch_operands = 0 : i64, tpu.core_type = #tpu.core_type<tc>, window_params = [{transform_indices = @transform_0, window_bounds = array<i64: 1>}, {transform_indices = @transform_1, window_bounds = array<i64: 1, 256>}, {pipeline_mode = #tpu.pipeline_mode<synchronous>, transform_indices = @transform_2, window_bounds = array<i64: 256, 128>}, {transform_indices = @transform_3, window_bounds = array<i64: 1, 128>}]} {
    %c0 = arith.constant 0 : index
    %c0_0 = arith.constant 0 : index
    %0 = vector.load %arg2[%c0, %c0_0] : memref<1x256xf32, #tpu.memory_space<vmem>>, vector<1x256xf32>
    %c0_1 = arith.constant 0 : index
    %c0_2 = arith.constant 0 : index
    %1 = vector.load %arg3[%c0_1, %c0_2] : memref<256x128xf32, #tpu.memory_space<vmem>>, vector<256x128xf32>
    %cst = arith.constant dense<0.000000e+00> : vector<1x128xf32>
    %2 = tpu.matmul %0, %1, %cst {dimension_numbers = #tpu.dot_dimension_numbers<[1], [0], [0], [1], [0, 0, 1, 1], [], []>, precision = #tpu.contract_precision<fp32>} : vector<1x256xf32>, vector<256x128xf32>, vector<1x128xf32> -> vector<1x128xf32>
    %c0_3 = arith.constant 0 : index
    %3 = memref.load %arg1[%c0_3] : memref<1xf32, #tpu.memory_space<smem>>
    %4 = vector.broadcast %3 : f32 to vector<1x128xf32>
    %5 = arith.addf %2, %4 : vector<1x128xf32>
    %cst_4 = arith.constant 0.000000e+00 : f32
    %6 = vector.broadcast %cst_4 : f32 to vector<1x128xf32>
    %7 = arith.subf %6, %5 : vector<1x128xf32>
    %8 = math.exp %7 : vector<1x128xf32>
    %cst_5 = arith.constant 1.000000e+00 : f32
    %9 = vector.broadcast %cst_5 : f32 to vector<1x128xf32>
    %10 = arith.addf %9, %8 : vector<1x128xf32>
    %11 = tpu.reciprocal %10 : vector<1x128xf32> -> vector<1x128xf32>
    %c0_6 = arith.constant 0 : index
    %c0_7 = arith.constant 0 : index
    %12 = vector.load %arg4[%c0_6, %c0_7] : memref<1x128xf32, #tpu.memory_space<vmem>>, vector<1x128xf32>
    tpu.vector_store %arg4[%c0_6, %c0_7], %11 {strides = array<i32>} : memref<1x128xf32, #tpu.memory_space<vmem>>, vector<1x128xf32>,
    return
  }
  func.func @transform_0(%arg0: i32) -> i32 {
    %c0_i32 = arith.constant 0 : i32
    %c0_i32_0 = arith.constant 0 : i32
    return %c0_i32 : i32
  }
  func.func @transform_1(%arg0: i32) -> (i32, i32) {
    %c0_i32 = arith.constant 0 : i32
    %c0_i32_0 = arith.constant 0 : i32
    return %arg0, %c0_i32 : i32, i32
  }
  func.func @transform_2(%arg0: i32) -> (i32, i32) {
    %c0_i32 = arith.constant 0 : i32
    %c0_i32_0 = arith.constant 0 : i32
    %c0_i32_1 = arith.constant 0 : i32
    return %c0_i32, %c0_i32_0 : i32, i32
  }
  func.func @transform_3(%arg0: i32) -> (i32, i32) {
    %c0_i32 = arith.constant 0 : i32
    %c0_i32_0 = arith.constant 0 : i32
    return %arg0, %c0_i32 : i32, i32
  }
}

</mosaic_0001>

<bundles_post_ra>
// kernel: simplenet_forward.1
= control target key start
LH: loop header
LB: loop body
LE: loop exit
PB: predicated region body
PF: predicated region fallthrough
CT: control target
= control target key end

     0   :  { %s1883_s2 = inlined_call_operand.vmem [shape: f32[256,128], index: 2, kind: input, shape index: {}]   ;;  %s1884_s1 = inlined_call_operand.vmem [shape: f32[1,256], index: 1, kind: input, shape index: {}]   ;;  %s1885_s0 = inlined_call_operand.<no memory space> [shape: f32[1], index: 0, kind: input, shape index: {}]   ;;  %s1886_s3 = inlined_call_operand.vmem [shape: f32[1,128], index: 3, kind: output, shape index: {}]  }
   0x1   :  { %v32_v0 = vld [vmem:[%s1883_s2 + $0x80] sm:$0xff]  ;;  %v33_v1 = vld [vmem:[%s1883_s2 + $0x88] sm:$0xff]  ;;  %v34_v7 = vld [vmem:[%s1883_s2 + $0x90] sm:$0xff] }
   0x2   :  { %v16_v2 = vld [vmem:[%s1883_s2] sm:$0xff]  ;;  %v110_v3 = vand.u32 4294901760, %v32_v0  ;;  %v113_v4 = vand.u32 4294901760, %v33_v1  ;;  %v17_v5 = vld [vmem:[%s1883_s2 + $0x8] sm:$0xff]  ;;  %v35_v8 = vld [vmem:[%s1883_s2 + $0x98] sm:$0xff]  ;;  %v116_v10 = vand.u32 4294901760, %v34_v7 }
   0x3   :  { %v62_v6 = vand.u32 4294901760, %v16_v2  ;;  %v65_v9 = vand.u32 4294901760, %v17_v5  ;;  %v119_v11 = vand.u32 4294901760, %v35_v8  ;;  %v18_v12 = vld [vmem:[%s1883_s2 + $0x10] sm:$0xff]  ;;  %v19_v13 = vld [vmem:[%s1883_s2 + $0x18] sm:$0xff]  ;;  %v36_v18 = vld [vmem:[%s1883_s2 + $0xa0] sm:$0xff] }
   0x4   :  { %v1383_v14 = vpack.c.bf16 %v113_v4, %v110_v3  ;;  %v68_v16 = vand.u32 4294901760, %v18_v12  ;;  %v71_v17 = vand.u32 4294901760, %v19_v13  ;;  %v37_v19 = vld [vmem:[%s1883_s2 + $0xa8] sm:$0xff]  ;;  %v20_v23 = vld [vmem:[%s1883_s2 + $0x20] sm:$0xff]  ;;  %v1406_v26 = vsub.f32 %v34_v7, %v116_v10  ;;  %v38_v38 = vld [vmem:[%s1883_s2 + $0xb0] sm:$0xff] }
   0x5   :  { %v1385_v15 = vsub.f32 %v16_v2, %v62_v6  ;;  %v1393_v20 = vpack.c.bf16 %v65_v9, %v62_v6  ;;  %v1395_v21 = vsub.f32 %v17_v5, %v65_v9  ;;  %v1397_v22 = vpack.c.bf16 %v119_v11, %v116_v10  ;;  %v21_v24 = vld [vmem:[%s1883_s2 + $0x28] sm:$0xff]  ;;  %v39_v43 = vld [vmem:[%s1883_s2 + $0xb8] sm:$0xff]  ;;  %v22_v56 = vld [vmem:[%s1883_s2 + $0x30] sm:$0xff] }
   0x6   :  { %1144 = vmatprep.subr.bf16.mxu0 %v1383_v14  ;;  %v1408_v27 = vsub.f32 %v35_v8, %v119_v11  ;;  %v1410_v28 = vpack.c.bf16 %v71_v17, %v68_v16  ;;  %v1412_v29 = vsub.f32 %v18_v12, %v68_v16  ;;  %v122_v30 = vand.u32 4294901760, %v36_v18  ;;  %v23_v57 = vld [vmem:[%s1883_s2 + $0x38] sm:$0xff]  ;;  %v40_v6 = vld [vmem:[%s1883_s2 + $0xc0] sm:$0xff]  ;;  %v41_v7 = vld [vmem:[%s1883_s2 + $0xc8] sm:$0xff] }
   0x7   :  { %1146 = vmatpush3.bf16.msra.mxu0 %v1393_v20  ;;  %v125_v31 = vand.u32 4294901760, %v37_v19  ;;  %v1415_v32 = vsub.f32 %v32_v0, %v110_v3  ;;  %v1417_v33 = vsub.f32 %v33_v1, %v113_v4  ;;  %v74_v34 = vand.u32 4294901760, %v20_v23  ;;  %v24_v12 = vld [vmem:[%s1883_s2 + $0x40] sm:$0xff] }
   0x8   :  { %1148 = vmatprep.subr.bf16.mxu0 %v1397_v22  ;;  %v77_v35 = vand.u32 4294901760, %v21_v24  ;;  %v1903_v36 = vand.u32 4294901760, %v1385_v15  ;;  %v1901_v37 = vand.u32 4294901760, %v1395_v21  ;;  %v1425_v39 = vsub.f32 %v19_v13, %v71_v17 }
   0x9   :  { %v1427_v40 = vpack.c.bf16 %v125_v31, %v122_v30  ;;  %v1429_v41 = vsub.f32 %v36_v18, %v122_v30  ;;  %v1906_v42 = vand.u32 4294901760, %v1415_v32  ;;  %v1435_v44 = vsub.f32 %v37_v19, %v125_v31  ;;  %v25_v31 = vld [vmem:[%s1883_s2 + $0x48] sm:$0xff] }
   0xa   :  { %v1904_v45 = vand.u32 4294901760, %v1417_v33  ;;  %v1438_v46 = vpack.c.bf16 %v77_v35, %v74_v34  ;;  %v1440_v47 = vsub.f32 %v20_v23, %v74_v34  ;;  %v177_v49 = vsub.f32 %v1385_v15, %v1903_v36 }
   0xb   :  { %1150 = vmatpush3.bf16.msra.mxu0 %v1410_v28  ;;  %v289_v48 = vsub.f32 %v1415_v32, %v1906_v42  ;;  %v184_v50 = vsub.f32 %v1395_v21, %v1901_v37  ;;  %v128_v51 = vand.u32 4294901760, %v38_v38  ;;  %v131_v53 = vand.u32 4294901760, %v39_v43 }
   0xc   :  { %1152 = vmatprep.subr.bf16.mxu0 %v1427_v40  ;;  %v296_v52 = vsub.f32 %v1417_v33, %v1904_v45  ;;  %v1900_v54 = vand.u32 4294901760, %v1406_v26  ;;  %v1899_v55 = vand.u32 4294901760, %v1408_v27  ;;  %v1464_v59 = vsub.f32 %v21_v24, %v77_v35 }
   0xd   :  { %v290_v58 = vand.u32 4294901760, %v289_v48  ;;  %v178_v60 = vand.u32 4294901760, %v177_v49  ;;  %v185_v61 = vand.u32 4294901760, %v184_v50  ;;  %v1466_v63 = vpack.c.bf16 %v131_v53, %v128_v51 }
   0xe   :  { %v297_v62 = vand.u32 4294901760, %v296_v52  ;;  %v1468_v0 = vsub.f32 %v38_v38, %v128_v51  ;;  %v303_v1 = vsub.f32 %v1406_v26, %v1900_v54  ;;  %v310_v3 = vsub.f32 %v1408_v27, %v1899_v55 }
   0xf   :  { %1154 = vmatpush3.bf16.msra.mxu0 %v1438_v46  ;;  %v1177_v2 = vpack.c.bf16 %v185_v61, %v178_v60  ;;  %v80_v4 = vand.u32 4294901760, %v22_v56  ;;  %v83_v5 = vand.u32 4294901760, %v23_v57  ;;  %v1896_v10 = vand.u32 4294901760, %v1412_v29  ;;  %v43_v60 = vld [vmem:[%s1883_s2 + $0xd8] sm:$0xff] }
  0x10   :  { %v1175_v8 = vpack.c.bf16 %v297_v62, %v290_v58  ;;  %1156 = vmatprep.subr.bf16.mxu0 %v1466_v63  ;;  %v304_v9 = vand.u32 4294901760, %v303_v1  ;;  %v1894_v11 = vand.u32 4294901760, %v1425_v39  ;;  %v1489_v13 = vsub.f32 %v39_v43, %v131_v53 }
  0x11   :  { %v311_v16 = vand.u32 4294901760, %v310_v3  ;;  %v1491_v17 = vpack.c.bf16 %v83_v5, %v80_v4  ;;  %v1493_v18 = vsub.f32 %v22_v56, %v80_v4  ;;  %v191_v19 = vsub.f32 %v1412_v29, %v1896_v10  ;;  %v26_v3 = vld [vmem:[%s1883_s2 + $0x50] sm:$0xff] }
  0x12   :  { %1176 = vmatprep.subr.bf16.mxu1 %v1175_v8  ;;  %v198_v23 = vsub.f32 %v1425_v39, %v1894_v11  ;;  %v134_v24 = vand.u32 4294901760, %v40_v6  ;;  %v137_v30 = vand.u32 4294901760, %v41_v7  ;;  %v1893_v35 = vand.u32 4294901760, %v1429_v41 }
  0x13   :  { %1178 = vmatpush3.bf16.msra.mxu1 %v1177_v2  ;;  %v1179_v34 = vpack.c.bf16 %v311_v16, %v304_v9  ;;  %1158 = vmatpush3.bf16.msra.mxu0 %v1491_v17  ;;  %v1891_v38 = vand.u32 4294901760, %v1435_v44  ;;  %v86_v43 = vand.u32 4294901760, %v24_v12  ;;  %v1507_v48 = vsub.f32 %v23_v57, %v83_v5  ;;  %v42_v57 = vld [vmem:[%s1883_s2 + $0xd0] sm:$0xff] }
  0x14   :  { %v192_v49 = vand.u32 4294901760, %v191_v19  ;;  %v199_v50 = vand.u32 4294901760, %v198_v23  ;;  %v1509_v51 = vpack.c.bf16 %v137_v30, %v134_v24  ;;  %v1511_v52 = vsub.f32 %v40_v6, %v134_v24  ;;  %v27_v23 = vld [vmem:[%s1883_s2 + $0x58] sm:$0xff] }
  0x15   :  { %1180 = vmatprep.subr.bf16.mxu1 %v1179_v34  ;;  %v317_v53 = vsub.f32 %v1429_v41, %v1893_v35  ;;  %v324_v56 = vsub.f32 %v1435_v44, %v1891_v38  ;;  %v89_v58 = vand.u32 4294901760, %v25_v31  ;;  %v1526_v62 = vsub.f32 %v41_v7, %v137_v30 }
  0x16   :  { %v1181_v61 = vpack.c.bf16 %v199_v50, %v192_v49  ;;  %1160 = vmatprep.subr.bf16.mxu0 %v1509_v51  ;;  %v1890_v1 = vand.u32 4294901760, %v1440_v47  ;;  %v1889_v2 = vand.u32 4294901760, %v1464_v59  ;;  %v1535_v8 = vsub.f32 %v24_v12, %v86_v43 }
  0x17   :  { %v318_v4 = vand.u32 4294901760, %v317_v53  ;;  %v325_v5 = vand.u32 4294901760, %v324_v56  ;;  %v1533_v6 = vpack.c.bf16 %v89_v58, %v86_v43  ;;  %v140_v16 = vand.u32 4294901760, %v42_v57 }
  0x18   :  { %1182 = vmatpush3.bf16.msra.mxu1 %v1181_v61  ;;  %v205_v7 = vsub.f32 %v1440_v47, %v1890_v1  ;;  %v212_v9 = vsub.f32 %v1464_v59, %v1889_v2  ;;  %v143_v19 = vand.u32 4294901760, %v43_v60  ;;  %v1888_v12 = vand.u32 4294901760, %v1468_v0 }
  0x19   :  { %v1183_v24 = vpack.c.bf16 %v325_v5, %v318_v4  ;;  %1162 = vmatpush3.bf16.msra.mxu0 %v1533_v6  ;;  %v1887_v30 = vand.u32 4294901760, %v1489_v13  ;;  %v92_v34 = vand.u32 4294901760, %v26_v3  ;;  %v1549_v43 = vsub.f32 %v25_v31, %v89_v58  ;;  %v44_v31 = vld [vmem:[%s1883_s2 + $0xe0] sm:$0xff]  ;;  %v45_v58 = vld [vmem:[%s1883_s2 + $0xe8] sm:$0xff] }
  0x1a   :  { %v206_v49 = vand.u32 4294901760, %v205_v7  ;;  %v213_v50 = vand.u32 4294901760, %v212_v9  ;;  %v1551_v53 = vpack.c.bf16 %v143_v19, %v140_v16  ;;  %v1553_v56 = vsub.f32 %v42_v57, %v140_v16 }
  0x1b   :  { %1184 = vmatprep.subr.bf16.mxu1 %v1183_v24  ;;  %v331_v61 = vsub.f32 %v1468_v0, %v1888_v12  ;;  %v338_v4 = vsub.f32 %v1489_v13, %v1887_v30  ;;  %v95_v5 = vand.u32 4294901760, %v27_v23  ;;  %v1568_v57 = vsub.f32 %v43_v60, %v143_v19  ;;  %v28_v24 = vld [vmem:[%s1883_s2 + $0x60] sm:$0xff] }
  0x1c   :  { %v1185_v7 = vpack.c.bf16 %v213_v50, %v206_v49  ;;  %1164 = vmatprep.subr.bf16.mxu0 %v1551_v53  ;;  %v1892_v9 = vand.u32 4294901760, %v1493_v18  ;;  %v1895_v16 = vand.u32 4294901760, %v1507_v48  ;;  %v1577_v1 = vsub.f32 %v26_v3, %v92_v34 }
  0x1d   :  { %v332_v30 = vand.u32 4294901760, %v331_v61  ;;  %v339_v12 = vand.u32 4294901760, %v338_v4  ;;  %v1575_v2 = vpack.c.bf16 %v95_v5, %v92_v34  ;;  %v146_v49 = vand.u32 4294901760, %v44_v31  ;;  %v29_v61 = vld [vmem:[%s1883_s2 + $0x68] sm:$0xff] }
  0x1e   :  { %1186 = vmatpush3.bf16.msra.mxu1 %v1185_v7  ;;  %v219_v60 = vsub.f32 %v1493_v18, %v1892_v9  ;;  %v226_v19 = vsub.f32 %v1507_v48, %v1895_v16  ;;  %v149_v50 = vand.u32 4294901760, %v45_v58  ;;  %v1898_v3 = vand.u32 4294901760, %v1511_v52 }
  0x1f   :  { %1931 = vst [vmem:[#allocation3_spill] sm:$0xff] %v1575_v2  ;;  %v1187_v4 = vpack.c.bf16 %v339_v12, %v332_v30  ;;  %1166 = vmatpush3.bf16.msra.mxu0 %v1575_v2  ;;  %v1897_v34 = vand.u32 4294901760, %v1526_v62  ;;  %v98_v7 = vand.u32 4294901760, %v28_v24  ;;  %v1591_v38 = vsub.f32 %v27_v23, %v95_v5  ;;  %v46_v23 = vld [vmem:[%s1883_s2 + $0xf0] sm:$0xff]  ;;  %v47_v5 = vld [vmem:[%s1883_s2 + $0xf8] sm:$0xff] }
  0x20   :  { %v220_v9 = vand.u32 4294901760, %v219_v60  ;;  %v227_v35 = vand.u32 4294901760, %v226_v19  ;;  %v1593_v11 = vpack.c.bf16 %v149_v50, %v146_v49  ;;  %v1595_v16 = vsub.f32 %v44_v31, %v146_v49 }
  0x21   :  { %1188 = vmatprep.subr.bf16.mxu1 %v1187_v4  ;;  %v345_v12 = vsub.f32 %v1511_v52, %v1898_v3  ;;  %v352_v30 = vsub.f32 %v1526_v62, %v1897_v34  ;;  %v101_v10 = vand.u32 4294901760, %v29_v61  ;;  %v1610_v31 = vsub.f32 %v45_v58, %v149_v50  ;;  %v30_v4 = vld [vmem:[%s1883_s2 + $0x70] sm:$0xff] }
  0x22   :  { %1932 = vst [vmem:[#allocation4_spill] sm:$0xff] %v1593_v11  ;;  %v1189_v60 = vpack.c.bf16 %v227_v35, %v220_v9  ;;  %1168 = vmatprep.subr.bf16.mxu0 %v1593_v11  ;;  %v1902_v19 = vand.u32 4294901760, %v1535_v8  ;;  %v1905_v49 = vand.u32 4294901760, %v1549_v43  ;;  %v1619_v54 = vsub.f32 %v28_v24, %v98_v7 }
  0x23   :  { %v346_v34 = vand.u32 4294901760, %v345_v12  ;;  %v353_v3 = vand.u32 4294901760, %v352_v30  ;;  %v1617_v55 = vpack.c.bf16 %v101_v10, %v98_v7  ;;  %v152_v9 = vand.u32 4294901760, %v46_v23  ;;  %v31_v12 = vld [vmem:[%s1883_s2 + $0x78] sm:$0xff] }
  0x24   :  { %1190 = vmatpush3.bf16.msra.mxu1 %v1189_v60  ;;  %v233_v35 = vsub.f32 %v1535_v8, %v1902_v19  ;;  %v240_v58 = vsub.f32 %v1549_v43, %v1905_v49  ;;  %v155_v50 = vand.u32 4294901760, %v47_v5  ;;  %v1908_v24 = vand.u32 4294901760, %v1553_v56 }
  0x25   :  { %1933 = vst [vmem:[#allocation5_spill] sm:$0xff] %v1617_v55  ;;  %v1191_v30 = vpack.c.bf16 %v353_v3, %v346_v34  ;;  %1170 = vmatpush3.bf16.msra.mxu0 %v1617_v55  ;;  %v1907_v7 = vand.u32 4294901760, %v1568_v57  ;;  %v104_v60 = vand.u32 4294901760, %v30_v4  ;;  %v1633_v37 = vsub.f32 %v29_v61, %v101_v10 }
  0x26   :  { %v234_v19 = vand.u32 4294901760, %v233_v35  ;;  %v241_v36 = vand.u32 4294901760, %v240_v58  ;;  %v1635_v45 = vpack.c.bf16 %v155_v50, %v152_v9  ;;  %v1637_v49 = vsub.f32 %v46_v23, %v152_v9 }
  0x27   :  { %1192 = vmatprep.subr.bf16.mxu1 %v1191_v30  ;;  %v359_v3 = vsub.f32 %v1553_v56, %v1908_v24  ;;  %v366_v34 = vsub.f32 %v1568_v57, %v1907_v7  ;;  %v107_v42 = vand.u32 4294901760, %v31_v12  ;;  %v1646_v10 = vsub.f32 %v47_v5, %v155_v50 }
  0x28   :  { %1934 = vst [vmem:[#allocation6_spill] sm:$0xff] %v1635_v45  ;;  %1935 = vst [vmem:[#allocation7_spill] sm:$0xff] %v1637_v49  ;;  %v1193_v25 = vpack.c.bf16 %v241_v36, %v234_v19  ;;  %1172 = vmatprep.subr.bf16.mxu0 %v1635_v45  ;;  %v1910_v61 = vand.u32 4294901760, %v1577_v1  ;;  %v1909_v35 = vand.u32 4294901760, %v1591_v38  ;;  %v1652_v30 = vsub.f32 %v30_v4, %v104_v60  ;;  %v15_v4 = vld [vmem:[%s1884_s1] sm:$0x3] }
  0x29   :  { %1936 = vst [vmem:[#allocation8_spill] sm:$0xff] %v1646_v10  ;;  %v360_v23 = vand.u32 4294901760, %v359_v3  ;;  %v367_v58 = vand.u32 4294901760, %v366_v34  ;;  %v1650_v9 = vpack.c.bf16 %v107_v42, %v104_v60  ;;  %v1939_v5 = vlaneseq }
  0x2a   :  { %1938 = vst [vmem:[#allocation10_spill] sm:$0xff] %v1652_v30  ;;  %1194 = vmatpush3.bf16.msra.mxu1 %v1193_v25  ;;  %v247_v7 = vsub.f32 %v1577_v1, %v1910_v61  ;;  %v254_v36 = vsub.f32 %v1591_v38, %v1909_v35  ;;  %v1921_v50 = vand.u32 4294901760, %v1595_v16  ;;  %v1922_v25 = vand.u32 4294901760, %v1610_v31 }
  0x2b   :  { %1937 = vst [vmem:[#allocation9_spill] sm:$0xff] %v1650_v9  ;;  %v52_v19 = vshrl.u32 %v1939_v5, 7  ;;  %v1195_v24 = vpack.c.bf16 %v367_v58, %v360_v23  ;;  %1174 = vmatpush3.bf16.msra.mxu0 %v1650_v9  ;;  %v1207_v60 = vpack.c.bf16 %v1417_v33, %v1415_v32  ;;  %v1923_v3 = vand.u32 4294901760, %v1619_v54 }
  0x2c   :  { %v248_v34 = vand.u32 4294901760, %v247_v7  ;;  %v255_v35 = vand.u32 4294901760, %v254_v36  ;;  %v373_v23 = vsub.f32 %v1595_v16, %v1921_v50  ;;  %v380_v58 = vsub.f32 %v1610_v31, %v1922_v25 }
  0x2d   :  { %v53_v61 = vsub.s32 0, %v52_v19  ;;  %v57_v5 = vsub.s32 1, %v52_v19  ;;  %1196 = vmatprep.subr.bf16.mxu1 %v1195_v24  ;;  %1208 = vmatprep.subr.bf16.mxu0 %v1207_v60  ;;  %v261_v9 = vsub.f32 %v1619_v54, %v1923_v3  ;;  %v1924_v45 = vand.u32 4294901760, %v1633_v37 }
  0x2e   :  { %v1680_v7 = vsub.f32 %v31_v12, %v107_v42  ;;  %v1197_v36 = vpack.c.bf16 %v255_v35, %v248_v34  ;;  %v374_v55 = vand.u32 4294901760, %v373_v23  ;;  %v381_v11 = vand.u32 4294901760, %v380_v58 }
  0x2f   :  { %v54_v19 = vrot.slane %v15_v4, %v53_v61  ;;  %v58_v24 = vrot.slane %v15_v4, %v57_v5  ;;  %v262_v2 = vand.u32 4294901760, %v261_v9  ;;  %v268_v50 = vsub.f32 %v1633_v37, %v1924_v45 }
  0x30   :  { %1198 = vmatpush3.bf16.msra.mxu1 %v1197_v36  ;;  %v386_v3 = vand.u32 4294901760, %v1637_v49  ;;  %v393_v42 = vand.u32 4294901760, %v1646_v10  ;;  %v1199_v12 = vpack.c.bf16 %v381_v11, %v374_v55  ;;  %v274_v61 = vand.u32 4294901760, %v1652_v30 }
  0x31   :  { %v1685_v60 = vand.u32 4294901760, %v58_v24  ;;  %v1687_v25 = vand.u32 4294901760, %v54_v19  ;;  %v269_v35 = vand.u32 4294901760, %v268_v50  ;;  %v281_v55 = vand.u32 4294901760, %v1680_v7 }
  0x32   :  { %v387_v34 = vsub.f32 %v1637_v49, %v386_v3  ;;  %v394_v5 = vsub.f32 %v1646_v10, %v393_v42  ;;  %1200 = vmatprep.subr.bf16.mxu1 %v1199_v12  ;;  %v275_v58 = vsub.f32 %v1652_v30, %v274_v61  ;;  %v1209_v10 = vpack.c.bf16 %v1395_v21, %v1385_v15 }
  0x33   :  { %1940 = vst [vmem:[#allocation11_spill] sm:$0xff] %v1685_v60  ;;  %v158_v4 = vsub.f32 %v58_v24, %v1685_v60  ;;  %v1694_v9 = vsub.f32 %v54_v19, %v1687_v25  ;;  %398 = vmatprep.mubr.f32.mxu1 %v1685_v60  ;;  %v1201_v23 = vpack.c.bf16 %v269_v35, %v262_v2 }
  0x34   :  { %v388_v36 = vand.u32 4294901760, %v387_v34  ;;  %v395_v24 = vand.u32 4294901760, %v394_v5  ;;  %v276_v19 = vand.u32 4294901760, %v275_v58  ;;  %v282_v45 = vsub.f32 %v1680_v7, %v281_v55 }
  0x35   :  { %v159_v11 = vand.u32 4294901760, %v158_v4  ;;  %v1930_v50 = vand.u32 4294901760, %v1694_v9  ;;  %1202 = vmatpush3.bf16.msra.mxu1 %v1201_v23  ;;  %v1211_v34 = vpack.c.bf16 %v1408_v27, %v1406_v26  ;;  %v1213_v23 = vpack.c.bf16 %v1425_v39, %v1412_v29 }
  0x36   :  { %v1203_v12 = vpack.c.bf16 %v395_v24, %v388_v36  ;;  %v283_v2 = vand.u32 4294901760, %v282_v45  ;;  %v1215_v58 = vpack.c.bf16 %v1435_v44, %v1429_v41  ;;  %v1941_v36 = vand.u32 4294901760, %v1415_v32 }
  0x37   :  { %v160_v49 = vsub.f32 %v158_v4, %v159_v11  ;;  %v166_v60 = vsub.f32 %v1694_v9, %v1930_v50  ;;  %v1942_v45 = vand.u32 4294901760, %v1417_v33  ;;  %v1944_v24 = vand.u32 4294901760, %v1395_v21 }
  0x38   :  { %1204 = vmatprep.subr.bf16.mxu1 %v1203_v12  ;;  %v1205_v5 = vpack.c.bf16 %v283_v2, %v276_v19  ;;  %v1945_v19 = vand.u32 4294901760, %v1406_v26  ;;  %v1946_v2 = vand.u32 4294901760, %v1408_v27  ;;  %v1948_v32 = vand.u32 4294901760, %v1425_v39 }
  0x39   :  { %v161_v35 = vand.u32 4294901760, %v160_v49  ;;  %v167_v30 = vand.u32 4294901760, %v166_v60  ;;  %v1271_v49 = vpack.c.bf16 %v1942_v45, %v1941_v36  ;;  %v1943_v60 = vand.u32 4294901760, %v1385_v15 }
  0x3a   :  { %v1728_v50 = vpack.c.bf16 %v1946_v2, %v1945_v19  ;;  %1206 = vmatpush3.bf16.msra.mxu1 %v1205_v5  ;;  %v1949_v15 = vand.u32 4294901760, %v1429_v41  ;;  %v1950_v21 = vand.u32 4294901760, %v1435_v44  ;;  %v1951_v26 = vand.u32 4294901760, %v1440_v47 }
  0x3b   :  { %162 = vmatprep.mubr.f32.mxu0 %v161_v35  ;;  %v1722_v12 = vpack.c.bf16 %v1944_v24, %v1943_v60  ;;  %v1947_v35 = vand.u32 4294901760, %v1412_v29  ;;  %v1952_v27 = vand.u32 4294901760, %v1464_v59  ;;  %1240 = vmatprep.subr.bf16.mxu1 %v1383_v14  ;;  %v1953_v29 = vand.u32 4294901760, %v1468_v0 }
  0x3c   :  { %168 = vmatmul.mubr.f32.vlgmr.msra.gmra.mrb[0].mxu0 %v167_v30  ;;  %v1740_v36 = vpack.c.bf16 %v1950_v21, %v1949_v15  ;;  %v1954_v39 = vand.u32 4294901760, %v1489_v13  ;;  %v1955_v41 = vand.u32 4294901760, %v1493_v18  ;;  %v1956_v44 = vand.u32 4294901760, %v1507_v48 }
  0x3d   :  { %v1734_v33 = vpack.c.bf16 %v1948_v32, %v1947_v35  ;;  %v1746_v45 = vpack.c.bf16 %v1952_v27, %v1951_v26  ;;  %1210 = vmatpush3.bf16.msra.mxu0 %v1209_v10  ;;  %v1957_v60 = vand.u32 4294901760, %v1511_v52  ;;  %v1958_v24 = vand.u32 4294901760, %v1526_v62  ;;  %535 = vmatprep.mubr.f32.mxu0 %v158_v4 }
  0x3e   :  { %v1753_v30 = vpack.c.bf16 %v1954_v39, %v1953_v29  ;;  %v1759_v5 = vpack.c.bf16 %v1956_v44, %v1955_v41  ;;  %1212 = vmatprep.subr.bf16.mxu0 %v1211_v34  ;;  %v1959_v10 = vand.u32 4294901760, %v1535_v8  ;;  %v1960_v2 = vand.u32 4294901760, %v1549_v43  ;;  %400 = vmatmul.mubr.f32.vlgmr.msra.gmra.mrb[0].mxu1 %v1687_v25 }
  0x3f   :  { %v1765_v19 = vpack.c.bf16 %v1958_v24, %v1957_v60  ;;  %v1961_v32 = vand.u32 4294901760, %v1553_v56  ;;  %v1962_v15 = vand.u32 4294901760, %v1568_v57  ;;  %v1963_v26 = vand.u32 4294901760, %v1577_v1  ;;  %1242 = vmatpush3.bf16.msra.mxu1 %v1393_v20  ;;  %642 = vmatprep.mubr.f32.mxu1 %v159_v11 }
  0x40   :  { %v1771_v35 = vpack.c.bf16 %v1960_v2, %v1959_v10  ;;  %v1964_v27 = vand.u32 4294901760, %v1591_v38  ;;  %v1965_v4 = vand.u32 4294901760, %v1595_v16  ;;  %v1966_v34 = vand.u32 4294901760, %v1610_v31  ;;  %1244 = vmatprep.subr.bf16.mxu1 %v1397_v22 }
  0x41   :  { %v1777_v21 = vpack.c.bf16 %v1962_v15, %v1961_v32  ;;  %v1967_v41 = vand.u32 4294901760, %v1619_v54  ;;  %v1968_v44 = vand.u32 4294901760, %v1633_v37  ;;  %v1798_v24 = vpack.c.bf16 %v393_v42, %v386_v3  ;;  %1214 = vmatpush3.bf16.msra.mxu0 %v1213_v23 }
  0x42   :  { %v1783_v29 = vpack.c.bf16 %v1964_v27, %v1963_v26  ;;  %v1790_v39 = vpack.c.bf16 %v1966_v34, %v1965_v4  ;;  %v1800_v10 = vpack.c.bf16 %v281_v55, %v274_v61  ;;  %v1217_v2 = vpack.c.bf16 %v1464_v59, %v1440_v47  ;;  %1216 = vmatprep.subr.bf16.mxu0 %v1215_v58 }
  0x43   :  { %v1796_v60 = vpack.c.bf16 %v1968_v44, %v1967_v41  ;;  %v1219_v32 = vpack.c.bf16 %v1489_v13, %v1468_v0  ;;  %1246 = vmatpush3.bf16.msra.mxu1 %v1410_v28  ;;  %v1221_v3 = vpack.c.bf16 %v1507_v48, %v1493_v18  ;;  %v1223_v42 = vpack.c.bf16 %v1526_v62, %v1511_v52  ;;  %v1969_v48 = vld [vmem:[#allocation7_spill] sm:$0xff]  ;;  %v1970_v52 = vld [vmem:[#allocation8_spill] sm:$0xff] }
  0x44   :  { %1248 = vmatprep.subr.bf16.mxu1 %v1427_v40  ;;  %v1225_v47 = vpack.c.bf16 %v1549_v43, %v1535_v8  ;;  %v1227_v59 = vpack.c.bf16 %v1568_v57, %v1553_v56  ;;  %v1229_v0 = vpack.c.bf16 %v1591_v38, %v1577_v1  ;;  %v1231_v13 = vpack.c.bf16 %v1610_v31, %v1595_v16  ;;  %v1971_v8 = vld [vmem:[#allocation3_spill] sm:$0xff]  ;;  %v1972_v38 = vld [vmem:[#allocation10_spill] sm:$0xff]  ;;  %v1973_v43 = vld [vmem:[#allocation4_spill] sm:$0xff] }
  0x45   :  { %1218 = vmatpush3.bf16.msra.mxu0 %v1217_v2  ;;  %v1233_v18 = vpack.c.bf16 %v1633_v37, %v1619_v54  ;;  %v1235_v62 = vpack.c.bf16 %v1970_v52, %v1969_v48  ;;  %v1237_v1 = vpack.c.bf16 %v1680_v7, %v1972_v38  ;;  %v1974_v56 = vld [vmem:[#allocation5_spill] sm:$0xff]  ;;  %v1975_v57 = vld [vmem:[#allocation6_spill] sm:$0xff]  ;;  %v1977_v54 = vld [vmem:[#allocation11_spill] sm:$0xff]  ;;  %v1978_v16 = vand.u32 4294901760, %v1694_v9 }
  0x46   :  { %1220 = vmatprep.subr.bf16.mxu0 %v1219_v32  ;;  %v1976_v37 = vld [vmem:[#allocation9_spill] sm:$0xff] }
  0x47   :  { %1250 = vmatpush3.bf16.msra.mxu1 %v1438_v46 }
  0x48   :  { %1252 = vmatprep.subr.bf16.mxu1 %v1466_v63 }
  0x49   :  { %1222 = vmatpush3.bf16.msra.mxu0 %v1221_v3 }
  0x4a   :  { %1224 = vmatprep.subr.bf16.mxu0 %v1223_v42 }
  0x4b   :  { %1254 = vmatpush3.bf16.msra.mxu1 %v1491_v17 }
  0x4c   :  { %1256 = vmatprep.subr.bf16.mxu1 %v1509_v51 }
  0x4d   :  { %1226 = vmatpush3.bf16.msra.mxu0 %v1225_v47 }
  0x4e   :  { %1228 = vmatprep.subr.bf16.mxu0 %v1227_v59 }
  0x4f   :  { %1258 = vmatpush3.bf16.msra.mxu1 %v1533_v6 }
  0x50   :  { %1260 = vmatprep.subr.bf16.mxu1 %v1551_v53 }
  0x51   :  { %1230 = vmatpush3.bf16.msra.mxu0 %v1229_v0 }
  0x52   :  { %1232 = vmatprep.subr.bf16.mxu0 %v1231_v13 }
  0x53   :  { %1262 = vmatpush3.bf16.msra.mxu1 %v1971_v8 }
  0x54   :  { %1264 = vmatprep.subr.bf16.mxu1 %v1973_v43 }
  0x55   :  { %1234 = vmatpush3.bf16.msra.mxu0 %v1233_v18 }
  0x56   :  { %1236 = vmatprep.subr.bf16.mxu0 %v1235_v62 }
  0x57   :  { %1266 = vmatpush3.bf16.msra.mxu1 %v1974_v56 }
  0x58   :  { %1268 = vmatprep.subr.bf16.mxu1 %v1975_v57 }
  0x59   :  { %1238 = vmatpush3.bf16.msra.mxu0 %v1237_v1 }
  0x5a   :  { %1272 = vmatprep.subr.bf16.mxu0 %v1271_v49 }
  0x5b   :  { %1270 = vmatpush3.bf16.msra.mxu1 %v1976_v37 }
  0x5c   :  { %538 = vmatmul.mubr.f32.vlgmr.msra.gmra.mrb[2].mxu0 %v1694_v9  ;;  %1304 = vmatprep.subr.bf16.mxu1 %v1383_v14 }
  0x5d   :  { %1274 = vmatpush3.bf16.msra.mxu0 %v1722_v12  ;;  %812 = vmatprep.mubr.f32.mxu0 %v1977_v54 }
  0x5e   :  { %1276 = vmatprep.subr.bf16.mxu0 %v1728_v50  ;;  %646 = vmatmul.mubr.f32.vlgmr.msra.gmra.mrb[2].mxu1 %v1978_v16 }
  0x5f   :  { %1306 = vmatpush3.bf16.msra.mxu1 %v1393_v20  ;;  %916 = vmatprep.mubr.f32.mxu1 %v1977_v54  ;;  %v49_v20 = vstv %s1885_s0 }
  0x60   :  { %1308 = vmatprep.subr.bf16.mxu1 %v1397_v22 }
  0x61   :  { %1278 = vmatpush3.bf16.msra.mxu0 %v1734_v33 }
  0x62   :  { %1280 = vmatprep.subr.bf16.mxu0 %v1740_v36 }
  0x63   :  { %1310 = vmatpush3.bf16.msra.mxu1 %v1410_v28 }
  0x64   :  { %1312 = vmatprep.subr.bf16.mxu1 %v1427_v40 }
  0x65   :  { %1282 = vmatpush3.bf16.msra.mxu0 %v1746_v45 }
  0x66   :  { %1284 = vmatprep.subr.bf16.mxu0 %v1753_v30 }
  0x67   :  { %1314 = vmatpush3.bf16.msra.mxu1 %v1438_v46 }
  0x68   :  { %1316 = vmatprep.subr.bf16.mxu1 %v1466_v63 }
  0x69   :  { %1286 = vmatpush3.bf16.msra.mxu0 %v1759_v5 }
  0x6a   :  { %1288 = vmatprep.subr.bf16.mxu0 %v1765_v19 }
  0x6b   :  { %1318 = vmatpush3.bf16.msra.mxu1 %v1491_v17 }
  0x6c   :  { %1320 = vmatprep.subr.bf16.mxu1 %v1509_v51 }
  0x6d   :  { %1290 = vmatpush3.bf16.msra.mxu0 %v1771_v35 }
  0x6e   :  { %1292 = vmatprep.subr.bf16.mxu0 %v1777_v21 }
  0x6f   :  { %1322 = vmatpush3.bf16.msra.mxu1 %v1533_v6 }
  0x70   :  { %1324 = vmatprep.subr.bf16.mxu1 %v1551_v53 }
  0x71   :  { %1294 = vmatpush3.bf16.msra.mxu0 %v1783_v29 }
  0x72   :  { %1296 = vmatprep.subr.bf16.mxu0 %v1790_v39 }
  0x73   :  { %1326 = vmatpush3.bf16.msra.mxu1 %v1971_v8 }
  0x74   :  { %1328 = vmatprep.subr.bf16.mxu1 %v1973_v43 }
  0x75   :  { %1298 = vmatpush3.bf16.msra.mxu0 %v1796_v60 }
  0x76   :  { %1300 = vmatprep.subr.bf16.mxu0 %v1798_v24 }
  0x77   :  { %1330 = vmatpush3.bf16.msra.mxu1 %v1974_v56 }
  0x78   :  { %1332 = vmatprep.subr.bf16.mxu1 %v1975_v57 }
  0x79   :  { %1302 = vmatpush3.bf16.msra.mxu0 %v1800_v10 }
  0x7b   :  { %1334 = vmatpush3.bf16.msra.mxu1 %v1976_v37 }
  0x7c   :  { %814 = vmatmul.mubr.f32.vlgmr.msra.gmra.mrb[4].mxu0 %v1687_v25 }
  0x7e   :  { %918 = vmatmul.mubr.f32.vlgmr.msra.gmra.mrb[4].mxu1 %v1687_v25 }
 0x10f   :  { %v965_v14 = vpop.f32.mrb[0].mxu0 }
 0x110   :  { %v966_v22 = vpop.f32.mrb[1].mxu0 }
 0x111   :  { %v967_v28 = vadd.f32 %v966_v22, %v965_v14  ;;  %v1000_v40 = vpop.f32.mrb[0].mxu1 }
 0x112   :  { %v1001_v63 = vpop.f32.mrb[1].mxu1 }
 0x113   :  { %v170_v46 = vadd.f32 %v967_v28, %v49_v20  ;;  %v1002_v17 = vadd.f32 %v1001_v63, %v1000_v40 }
 0x115   :  { %v402_v51 = vadd.f32 %v1002_v17, %v170_v46 }
 0x12f   :  { %v1035_v6 = vpop.f32.mrb[2].mxu0 }
 0x130   :  { %v1036_v53 = vpop.f32.mrb[3].mxu0 }
 0x131   :  { %v1037_v31 = vadd.f32 %v1036_v53, %v1035_v6  ;;  %v1070_v7 = vpop.f32.mrb[2].mxu1 }
 0x132   :  { %v1071_v9 = vpop.f32.mrb[3].mxu1 }
 0x133   :  { %v540_v61 = vadd.f32 %v1037_v31, %v402_v51  ;;  %v1072_v55 = vadd.f32 %v1071_v9, %v1070_v7 }
 0x135   :  { %v648_v25 = vadd.f32 %v1072_v55, %v540_v61 }
 0x14f   :  { %v1105_v11 = vpop.f32.mrb[4].mxu0 }
 0x150   :  { %v1106_v50 = vpop.f32.mrb[5].mxu0 }
 0x151   :  { %v1107_v23 = vadd.f32 %v1106_v50, %v1105_v11  ;;  %v1140_v58 = vpop.f32.mrb[4].mxu1 }
 0x152   :  { %v1141_v12 = vpop.f32.mrb[5].mxu1 }
 0x153   :  { %v816_v49 = vadd.f32 %v1107_v23, %v648_v25  ;;  %v1142_v33 = vadd.f32 %v1141_v12, %v1140_v58 }
 0x155   :  { %v920_v36 = vadd.f32 %v1142_v33, %v816_v49 }
 0x157   :  { %v923_v45 = vsub.f32 0.0, %v920_v36 }
 0x159   :  { %v924_v30 = vmul.f32 1.442695, %v923_v45 }
 0x15b   :  { %1335 = vpow2.f32 %v924_v30 }
 0x165   :  { %v1336_v5 = vpop.eup %1335 }
 0x166   :  { %v926_v19 = vadd.f32 1.0, %v1336_v5 }
 0x168   :  { %1337 = vrcp.f32 %v926_v19 }
 0x172   :  { %v1338_v35 = vpop.eup %1337 }
 0x173   :  { %928 = vst [vmem:[%s1886_s3] sm:$0x1] %v1338_v35 }

</bundles_post_ra>
